<compile_context>
chip_gen: v7x
topology: tpu7x:2x2x1
jax: 0.10.0
libtpu: 0.0.40
codegen_flags: <defaults>
</compile_context>

<pallas_src>
import functools

import jax
import jax.numpy as jnp
from jax.experimental import pallas as pl
from jax.experimental.pallas import tpu as pltpu

SMOOTH = 1e-15
P_POW = 2          # module default self.p == 2
_LANES = 128


def _round_up(x, m):
    return ((x + m - 1) // m) * m


def _lane_fold(x, width):
    """(rows, G*width) -> (rows, width) using only elementwise (VPU) adds."""
    groups = x.shape[-1] // width
    acc = x[:, :width]
    for g in range(1, groups):
        acc = acc + x[:, g * width:(g + 1) * width]
    return acc


def _make_subloss_kernel(tn, n_valid, need_mask, acc_lanes):
    """Builds the kernel with static tiling parameters closed over."""

    def kernel(p_ref, t_ref, out_ref, num_acc, den_acc):
        k = pl.program_id(1)

        @pl.when(k == 0)
        def _init():
            num_acc[...] = jnp.zeros_like(num_acc)
            den_acc[...] = jnp.zeros_like(den_acc)

        x = p_ref[...].astype(jnp.float32)
        t = t_ref[...].astype(jnp.float32)
        # sigmoid(x) == 0.5 * tanh(x / 2) + 0.5 : single EUP op per element.
        p = 0.5 * jnp.tanh(0.5 * x) + 0.5

        diff = p - t
        sq_diff = diff * diff            # (sigmoid(x) - t)^2
        sq_pow = p * p + t * t           # sigmoid(x)^2 + t^2

        if need_mask:
            # Zero out lanes past the true row length N (only generated when
            # N is not a multiple of the chunk width).
            col = k * tn + jax.lax.broadcasted_iota(jnp.int32, x.shape, 1)
            valid = col < n_valid
            zero = jnp.float32(0.0)
            sq_diff = jnp.where(valid, sq_diff, zero)
            sq_pow = jnp.where(valid, sq_pow, zero)

        # Per-chunk: VPU-only folds into the vector accumulators.
        num_acc[...] += _lane_fold(sq_diff, acc_lanes)
        den_acc[...] += _lane_fold(sq_pow, acc_lanes)

        @pl.when(k == pl.num_programs(1) - 1)
        def _finalize():
            # Single cross-lane reduce per row block, then the divide.
            num = jnp.sum(num_acc[...], axis=-1, keepdims=True)
            den = jnp.sum(den_acc[...], axis=-1, keepdims=True)
            out_ref[...] = num / (den + jnp.float32(SMOOTH))

    return kernel


@functools.partial(jax.jit, static_argnames=("reduction", "chunk"))
def subloss(predict, target, *, reduction="mean", chunk=32768):
    assert predict.shape[0] == target.shape[0], (
        "predict & target batch size don't match")
    B = predict.shape[0]
    # Flatten to (B, N) exactly like torch `.view(B, -1)` on NCHW tensors.
    p2d = predict.reshape(B, -1)
    t2d = target.reshape(B, -1)
    N = p2d.shape[1]

    # --- tiling choices (all static) ---------------------------------------
    chunk = max(_LANES, (chunk // _LANES) * _LANES)       # multiple of 128
    tn = min(chunk, _round_up(N, _LANES))                 # lane width / chunk
    num_chunks = pl.cdiv(N, tn)
    need_mask = (N % tn) != 0

    block_b = min(B, 8)                                   # 8 sublanes or full B
    num_bblocks = pl.cdiv(B, block_b)

    # Widest accumulator (<= 8 vregs) that divides tn: keeps enough
    # independent add chains while staying layout-trivial.
    acc_lanes = max(c for c in (_LANES, 256, 512, 1024) if tn % c == 0)

    # VMEM use: 2 inputs x 2 buffers x block_b*tn*4B  (<= ~4 MiB at defaults),
    # safely within v5e's 16 MiB and v7x's 32 MiB scoped-VMEM defaults.
    kernel = _make_subloss_kernel(tn, N, need_mask, acc_lanes)

    per_batch = pl.pallas_call(
        kernel,
        out_shape=jax.ShapeDtypeStruct((B, 1), jnp.float32),
        grid_spec=pltpu.PrefetchScalarGridSpec(
            num_scalar_prefetch=0,
            grid=(num_bblocks, num_chunks),
            in_specs=[
                pl.BlockSpec((block_b, tn), lambda b, k: (b, k)),
                pl.BlockSpec((block_b, tn), lambda b, k: (b, k)),
            ],
            out_specs=pl.BlockSpec((block_b, 1), lambda b, k: (b, 0)),
            scratch_shapes=[
                pltpu.VMEM((block_b, acc_lanes), jnp.float32),  # num accum
                pltpu.VMEM((block_b, acc_lanes), jnp.float32),  # den accum
            ],
        ),
        compiler_params=pltpu.CompilerParams(
            dimension_semantics=("parallel", "arbitrary")),
    )(p2d, t2d)

    loss = per_batch[:, 0]
    if reduction == "mean":
        return jnp.mean(loss)
    elif reduction == "sum":
        return jnp.sum(loss)
    elif reduction == "none":
        return loss
    else:
        raise Exception("Unexpected reduction {}".format(reduction))


def _subloss_ref(predict, target, reduction="mean"):
    """Pure-JAX reference mirroring the PyTorch forward (for self-check)."""
    B = predict.shape[0]
    p = jax.nn.sigmoid(predict.astype(jnp.float32)).reshape(B, -1)
    t = target.astype(jnp.float32).reshape(B, -1)
    num = jnp.sum((p - t) ** P_POW, axis=1)
    den = jnp.sum(p ** P_POW + t ** P_POW, axis=1) + SMOOTH
    loss = num / den
    if reduction == "mean":
        return jnp.mean(loss)
    if reduction == "sum":
        return jnp.sum(loss)
    return loss


if __name__ == "__main__":
    key = jax.random.PRNGKey(0)
    k1, k2 = jax.random.split(key)

    # Small NCHW shapes: batch=2, channels=4, spatial=16x16.
    predict = jax.random.normal(k1, (2, 4, 16, 16), dtype=jnp.float32)
    # Binary-ish target (typical segmentation mask).
    target = (jax.random.uniform(k2, (2, 4, 16, 16)) > 0.5).astype(jnp.float32)

    out = subloss(predict, target, reduction="mean")
    out = jax.block_until_ready(out)

    ref = _subloss_ref(predict, target, reduction="mean")
    assert jnp.allclose(out, ref, atol=1e-5, rtol=1e-5), (out, ref)

    # Also exercise the ragged-N / masked path and 'none' reduction.
    predict2 = jax.random.normal(k1, (2, 3, 10, 10), dtype=jnp.float32)  # N=300
    target2 = (jax.random.uniform(k2, (2, 3, 10, 10)) > 0.5).astype(jnp.float32)
    out2 = jax.block_until_ready(subloss(predict2, target2, reduction="none"))
    ref2 = _subloss_ref(predict2, target2, reduction="none")
    assert jnp.allclose(out2, ref2, atol=1e-5, rtol=1e-5), (out2, ref2)

    print("KERNEL_OK")
</pallas_src>

<mosaic_0001>
module attributes {stable_mosaic.version = 11 : i64} {
  func.func @kernel(%arg0: i32, %arg1: i32, %arg2: memref<2x1024xf32, #tpu.memory_space<vmem>>, %arg3: memref<2x1024xf32, #tpu.memory_space<vmem>>, %arg4: memref<2x1xf32, #tpu.memory_space<vmem>>, %arg5: memref<2x1024xf32, #tpu.memory_space<vmem>>, %arg6: memref<2x1024xf32, #tpu.memory_space<vmem>>) attributes {dimension_semantics = [#tpu.dimension_semantics<parallel>, #tpu.dimension_semantics<arbitrary>], iteration_bounds = array<i64: 1, 1>, scalar_prefetch = 0 : i64, scratch_operands = 2 : i64, tpu.core_type = #tpu.core_type<tc>, window_params = [{transform_indices = @transform_0, window_bounds = array<i64: 2, 1024>}, {transform_indices = @transform_1, window_bounds = array<i64: 2, 1024>}, {transform_indices = @transform_2, window_bounds = array<i64: 2, 1>}]} {
    %c0_i32 = arith.constant 0 : i32
    %0 = arith.cmpi eq, %arg1, %c0_i32 : i32
    %1 = arith.extui %0 : i1 to i32
    %c0_i32_0 = arith.constant 0 : i32
    %2 = arith.cmpi ne, %1, %c0_i32_0 : i32
    scf.if %2 {
      %cst_16 = arith.constant 0.000000e+00 : f32
      %26 = vector.broadcast %cst_16 : f32 to vector<2x1024xf32>
      %c0_17 = arith.constant 0 : index
      %c0_18 = arith.constant 0 : index
      %27 = vector.load %arg5[%c0_17, %c0_18] : memref<2x1024xf32, #tpu.memory_space<vmem>>, vector<2x1024xf32>
      tpu.vector_store %arg5[%c0_17, %c0_18], %26 {strides = array<i32>} : memref<2x1024xf32, #tpu.memory_space<vmem>>, vector<2x1024xf32>,
      %cst_19 = arith.constant 0.000000e+00 : f32
      %28 = vector.broadcast %cst_19 : f32 to vector<2x1024xf32>
      %c0_20 = arith.constant 0 : index
      %c0_21 = arith.constant 0 : index
      %29 = vector.load %arg6[%c0_20, %c0_21] : memref<2x1024xf32, #tpu.memory_space<vmem>>, vector<2x1024xf32>
      tpu.vector_store %arg6[%c0_20, %c0_21], %28 {strides = array<i32>} : memref<2x1024xf32, #tpu.memory_space<vmem>>, vector<2x1024xf32>,
    } else {
    }
    %c0 = arith.constant 0 : index
    %c0_1 = arith.constant 0 : index
    %3 = vector.load %arg2[%c0, %c0_1] : memref<2x1024xf32, #tpu.memory_space<vmem>>, vector<2x1024xf32>
    %c0_2 = arith.constant 0 : index
    %c0_3 = arith.constant 0 : index
    %4 = vector.load %arg3[%c0_2, %c0_3] : memref<2x1024xf32, #tpu.memory_space<vmem>>, vector<2x1024xf32>
    %cst = arith.constant 5.000000e-01 : f32
    %5 = vector.broadcast %cst : f32 to vector<2x1024xf32>
    %6 = arith.mulf %5, %3 : vector<2x1024xf32>
    %7 = math.tanh %6 : vector<2x1024xf32>
    %cst_4 = arith.constant 5.000000e-01 : f32
    %8 = vector.broadcast %cst_4 : f32 to vector<2x1024xf32>
    %9 = arith.mulf %8, %7 : vector<2x1024xf32>
    %cst_5 = arith.constant 5.000000e-01 : f32
    %10 = vector.broadcast %cst_5 : f32 to vector<2x1024xf32>
    %11 = arith.addf %9, %10 : vector<2x1024xf32>
    %12 = arith.subf %11, %4 : vector<2x1024xf32>
    %13 = arith.mulf %12, %12 : vector<2x1024xf32>
    %14 = arith.mulf %11, %11 : vector<2x1024xf32>
    %15 = arith.mulf %4, %4 : vector<2x1024xf32>
    %16 = arith.addf %14, %15 : vector<2x1024xf32>
    %c0_6 = arith.constant 0 : index
    %c0_7 = arith.constant 0 : index
    %17 = vector.load %arg5[%c0_6, %c0_7] : memref<2x1024xf32, #tpu.memory_space<vmem>>, vector<2x1024xf32>
    %18 = arith.addf %17, %13 : vector<2x1024xf32>
    %c0_8 = arith.constant 0 : index
    %c0_9 = arith.constant 0 : index
    %19 = vector.load %arg5[%c0_8, %c0_9] : memref<2x1024xf32, #tpu.memory_space<vmem>>, vector<2x1024xf32>
    tpu.vector_store %arg5[%c0_8, %c0_9], %18 {strides = array<i32>} : memref<2x1024xf32, #tpu.memory_space<vmem>>, vector<2x1024xf32>,
    %c0_10 = arith.constant 0 : index
    %c0_11 = arith.constant 0 : index
    %20 = vector.load %arg6[%c0_10, %c0_11] : memref<2x1024xf32, #tpu.memory_space<vmem>>, vector<2x1024xf32>
    %21 = arith.addf %20, %16 : vector<2x1024xf32>
    %c0_12 = arith.constant 0 : index
    %c0_13 = arith.constant 0 : index
    %22 = vector.load %arg6[%c0_12, %c0_13] : memref<2x1024xf32, #tpu.memory_space<vmem>>, vector<2x1024xf32>
    tpu.vector_store %arg6[%c0_12, %c0_13], %21 {strides = array<i32>} : memref<2x1024xf32, #tpu.memory_space<vmem>>, vector<2x1024xf32>,
    %c0_i32_14 = arith.constant 0 : i32
    %23 = arith.cmpi eq, %arg1, %c0_i32_14 : i32
    %24 = arith.extui %23 : i1 to i32
    %c0_i32_15 = arith.constant 0 : i32
    %25 = arith.cmpi ne, %24, %c0_i32_15 : i32
    scf.if %25 {
      %c0_16 = arith.constant 0 : index
      %c0_17 = arith.constant 0 : index
      %26 = vector.load %arg5[%c0_16, %c0_17] : memref<2x1024xf32, #tpu.memory_space<vmem>>, vector<2x1024xf32>
      %cst_18 = arith.constant dense<0.000000e+00> : vector<2xf32>
      %27 = vector.multi_reduction <add>, %26, %cst_18 [1] : vector<2x1024xf32> to vector<2xf32>
      %28 = vector.shape_cast %27 : vector<2xf32> to vector<2x1xf32>
      %c0_19 = arith.constant 0 : index
      %c0_20 = arith.constant 0 : index
      %29 = vector.load %arg6[%c0_19, %c0_20] : memref<2x1024xf32, #tpu.memory_space<vmem>>, vector<2x1024xf32>
      %cst_21 = arith.constant dense<0.000000e+00> : vector<2xf32>
      %30 = vector.multi_reduction <add>, %29, %cst_21 [1] : vector<2x1024xf32> to vector<2xf32>
      %31 = vector.shape_cast %30 : vector<2xf32> to vector<2x1xf32>
      %cst_22 = arith.constant 1.000000e-15 : f32
      %32 = vector.broadcast %cst_22 : f32 to vector<2x1xf32>
      %33 = arith.addf %31, %32 : vector<2x1xf32>
      %34 = arith.divf %28, %33 : vector<2x1xf32>
      %c0_23 = arith.constant 0 : index
      %c0_24 = arith.constant 0 : index
      %35 = vector.load %arg4[%c0_23, %c0_24] : memref<2x1xf32, #tpu.memory_space<vmem>>, vector<2x1xf32>
      tpu.vector_store %arg4[%c0_23, %c0_24], %34 {strides = array<i32>} : memref<2x1xf32, #tpu.memory_space<vmem>>, vector<2x1xf32>,
    } else {
    }
    return
  }
  func.func @transform_0(%arg0: i32, %arg1: i32) -> (i32, i32) {
    %c0_i32 = arith.constant 0 : i32
    return %arg0, %arg1 : i32, i32
  }
  func.func @transform_1(%arg0: i32, %arg1: i32) -> (i32, i32) {
    %c0_i32 = arith.constant 0 : i32
    return %arg0, %arg1 : i32, i32
  }
  func.func @transform_2(%arg0: i32, %arg1: i32) -> (i32, i32) {
    %c0_i32 = arith.constant 0 : i32
    %c0_i32_0 = arith.constant 0 : i32
    return %arg0, %c0_i32 : i32, i32
  }
}

</mosaic_0001>

<bundles_post_ra>
// kernel: subloss.1
= control target key start
LH: loop header
LB: loop body
LE: loop exit
PB: predicated region body
PF: predicated region fallthrough
CT: control target
= control target key end

     0   :  { %v199_v4 = vmov 1983009808   ;;  %v64_v6 = vlaneseq  ;;  %vm102_vm0 = vcmask 1041408   ;;  %vm186_vm1 = vcmask 1024   ;;  %s246_s0 = inlined_call_operand.vmem [shape: f32[2,1024], index: 0, kind: input, shape index: {}]   ;;  %s247_s1 = inlined_call_operand.vmem [shape: f32[2,1024], index: 1, kind: input, shape index: {}]   ;;  %s248_s2 = inlined_call_operand.vmem [shape: f32[2,1], index: 2, kind: output, shape index: {}]  }
   0x1   :  { %v19_v0 = vld [vmem:[%s246_s0] sm:$0xff]  ;;  %v20_v1 = vld [vmem:[%s246_s0 + $0x8] sm:$0xff]  ;;  %v62_v5 = vunpack.c.l.s4 %v199_v4 }
   0x2   :  { %v23_v2 = vmul.f32 0.5, %v19_v0  ;;  %v24_v3 = vmul.f32 0.5, %v20_v1  ;;  %v21_v8 = vld [vmem:[%s247_s1] sm:$0xff]  ;;  %v22_v10 = vld [vmem:[%s247_s1 + $0x8] sm:$0xff]  ;;  %v65_v13 = vshrl.u32 %v64_v6, 7 }
   0x3   :  { %v63_v12 = vunpack.c.0.s8 %v62_v5  ;;  %v37_v16 = vmul.f32 %v21_v8, %v21_v8  ;;  %v38_v18 = vmul.f32 %v22_v10, %v22_v10 }
   0x4   :  { %193 = vtanh.f32 %v23_v2 }
   0x5   :  { %195 = vtanh.f32 %v24_v3  ;;  %v66_v20 = vsub.s32 %v63_v12, %v65_v13 }
   0xe   :  { %v194_v7 = vpop.eup %193 }
   0xf   :  { %v196_v9 = vpop.eup %195  ;;  %v27_v11 = vmul.f32 0.5, %v194_v7 }
  0x10   :  { %v28_v14 = vmul.f32 0.5, %v196_v9 }
  0x11   :  { %v29_v15 = vadd.f32 0.5, %v27_v11 }
  0x12   :  { %v30_v17 = vadd.f32 0.5, %v28_v14 }
  0x13   :  { %v35_v19 = vmul.f32 %v29_v15, %v29_v15  ;;  %v31_v21 = vsub.f32 %v29_v15, %v21_v8 }
  0x14   :  { %v36_v22 = vmul.f32 %v30_v17, %v30_v17  ;;  %v32_v23 = vsub.f32 %v30_v17, %v22_v10 }
  0x15   :  { %v39_v24 = vadd.f32 %v37_v16, %v35_v19  ;;  %v33_v25 = vmul.f32 %v31_v21, %v31_v21 }
  0x16   :  { %v40_v26 = vadd.f32 %v38_v18, %v36_v22  ;;  %v34_v33 = vmul.f32 %v32_v23, %v32_v23 }
  0x17   :  { %v124_v27 = vcombine.high %v39_v24, %v39_v24  ;;  %v131_v28 = vrot.slane %v39_v24, %v66_v20  ;;  %v60_v29 = vcombine.high %v33_v25, %v33_v25  ;;  %v67_v30 = vrot.slane %v33_v25, %v66_v20 }
  0x18   :  { %v141_v31 = vcombine.high %v40_v26, %v40_v26  ;;  %v148_v32 = vrot.slane %v40_v26, %v66_v20  ;;  %v77_v44 = vcombine.high %v34_v33, %v34_v33  ;;  %v84_v45 = vrot.slane %v34_v33, %v66_v20 }
  0x19   :  { %v138_v34 = vrot.slane %v124_v27, %v66_v20  ;;  %v139_v35 = vcombine.high %v131_v28, %v131_v28  ;;  %v166_v36 = vsel %vm102_vm0, %v131_v28, 0.0  ;;  %v74_v37 = vrot.slane %v60_v29, %v66_v20 }
  0x1a   :  { %v75_v38 = vcombine.high %v67_v30, %v67_v30  ;;  %v155_v46 = vrot.slane %v141_v31, %v66_v20  ;;  %v156_v47 = vcombine.high %v148_v32, %v148_v32  ;;  %v103_v49 = vsel %vm102_vm0, %v67_v30, 0.0 }
  0x1b   :  { %v140_v39 = vcombine.high %v138_v34, %v138_v34  ;;  %v167_v40 = vsel %vm102_vm0, %v139_v35, 0.0  ;;  %v169_v41 = vsel %vm102_vm0, %v138_v34, 0.0  ;;  %v76_v43 = vcombine.high %v74_v37, %v74_v37 }
  0x1c   :  { %v168_v42 = vadd.f32 %v167_v40, %v166_v36  ;;  %v104_v51 = vsel %vm102_vm0, %v75_v38, 0.0  ;;  %v106_v52 = vsel %vm102_vm0, %v74_v37, 0.0  ;;  %v173_v53 = vsel %vm102_vm0, %v148_v32, 0.0 }
  0x1d   :  { %v171_v48 = vsel %vm102_vm0, %v140_v39, 0.0  ;;  %v105_v54 = vadd.f32 %v104_v51, %v103_v49  ;;  %v91_v56 = vrot.slane %v77_v44, %v66_v20  ;;  %v92_v57 = vcombine.high %v84_v45, %v84_v45 }
  0x1e   :  { %v170_v50 = vadd.f32 %v169_v41, %v168_v42  ;;  %v108_v58 = vsel %vm102_vm0, %v76_v43, 0.0  ;;  %v157_v59 = vcombine.high %v155_v46, %v155_v46  ;;  %v175_v60 = vsel %vm102_vm0, %v156_v47, 0.0 }
  0x1f   :  { %v107_v61 = vadd.f32 %v106_v52, %v105_v54  ;;  %v110_v63 = vsel %vm102_vm0, %v84_v45, 0.0  ;;  %v177_v0 = vsel %vm102_vm0, %v155_v46, 0.0  ;;  %v93_v3 = vcombine.high %v91_v56, %v91_v56 }
  0x20   :  { %v172_v55 = vadd.f32 %v171_v48, %v170_v50  ;;  %v112_v4 = vsel %vm102_vm0, %v92_v57, 0.0  ;;  %v179_v5 = vsel %vm102_vm0, %v157_v59, 0.0  ;;  %v114_v8 = vsel %vm102_vm0, %v91_v56, 0.0 }
  0x21   :  { %v109_v1 = vadd.f32 %v108_v58, %v107_v61  ;;  %v116_v11 = vsel %vm102_vm0, %v93_v3, 0.0 }
  0x22   :  { %v174_v62 = vadd.f32 %v173_v53, %v172_v55 }
  0x23   :  { %v111_v6 = vadd.f32 %v110_v63, %v109_v1 }
  0x24   :  { %v176_v2 = vadd.f32 %v175_v60, %v174_v62 }
  0x25   :  { %v113_v9 = vadd.f32 %v112_v4, %v111_v6 }
  0x26   :  { %v178_v7 = vadd.f32 %v177_v0, %v176_v2 }
  0x27   :  { %v115_v12 = vadd.f32 %v114_v8, %v113_v9 }
  0x28   :  { %v180_v10 = vadd.f32 %v179_v5, %v178_v7 }
  0x29   :  { %v117_v13 = vadd.f32 %v116_v11, %v115_v12 }
  0x2a   :  { %181 = vadd.xlane.f32.xlu0 %v180_v10 }
  0x2e   :  { %118 = vadd.xlane.f32.xlu0 %v117_v13 }
  0xb7   :  { %v182_v14 = vpop.xlane.xlu0 %181 }
  0xb8   :  { %v183_v15 = vadd.f32 1e-15, %v182_v14 }
  0xba   :  { %197 = vrcp.f32 %v183_v15 }
  0xbb   :  { %v119_v16 = vpop.xlane.xlu0 %118 }
  0xc4   :  { %v198_v17 = vpop.eup %197 }
  0xc5   :  { %v185_v18 = vmul.f32 %v198_v17, %v119_v16 }
  0xc7   :  { %187 = vst.msk [vmem:[%s248_s2] sm:$0x3] %vm186_vm1, %v185_v18 }

</bundles_post_ra>
